<compile_context>
chip_gen: v7x
topology: tpu7x:2x2x1
jax: 0.10.0
libtpu: 0.0.40
codegen_flags: <defaults>
</compile_context>

<pallas_src>
import functools

import jax
import jax.numpy as jnp
from jax.experimental import pallas as pl
from jax.experimental.pallas import tpu as pltpu

IN_CH = 1
SEQ_LEN = 5           # L == kernel_size so L_out == 1
HIDDEN = 256
NUM_CLASSES = 10

K_PAD = 8             # 5 data cols + 1 bias-ones col + 2 zero cols
BIAS_COL = SEQ_LEN    # column of ones that folds in the conv bias
OUT_PAD_MM = 128      # FC matmul lane width (MXU friendly)
OUT_STORE = 16        # stored class width (10 -> 16): 8x less writeback
NEG_INF = -1e30       # pad-column logit -> softmax(pad) == 0 exactly
BN_EPS = 1e-5


def _round_up(x, m):
    return (x + m - 1) // m * m


def _fused_kernel(x_ref, wc_ref, wl_ref, bl_ref, out_ref):
    # x_ref:   (TILE_N, K_PAD)      bf16; cols 0..4 = conv window, col 5 = 1.0
    # wc_ref:  (K_PAD, HIDDEN)      bf16; rows 0..4 = conv weight, row 5 = conv bias
    # wl_ref:  (HIDDEN, OUT_PAD_MM) bf16; BN affine folded in, zero pad columns
    # bl_ref:  (1, OUT_PAD_MM)      f32;  folded bias, NEG_INF in pad columns
    # out_ref: (TILE_N, OUT_STORE)  f32;  softmax probabilities (cols 10..15 == 0)

    # Conv1d(1,256,k=5) + bias (via ones column) == (N,8)@(8,256) bf16 matmul.
    y = jnp.dot(x_ref[...], wc_ref[...], preferred_element_type=jnp.float32)

    # LeakyReLU(negative_slope=0.1): single mul + max.
    y = jnp.maximum(y, 0.1 * y)

    # BatchNorm1d (eval mode) is folded into wl/bl; Linear(256,10) in bf16.
    z = jnp.dot(y.astype(jnp.bfloat16), wl_ref[...],
                preferred_element_type=jnp.float32)
    z = z + bl_ref[...]

    # Softmax over the first OUT_STORE lanes (pad logits -1e30 -> exp == 0).
    z = z[:, :OUT_STORE]
    z_max = jnp.max(z, axis=-1, keepdims=True)
    e = jnp.exp(z - z_max)
    denom = jnp.sum(e, axis=-1, keepdims=True)
    out_ref[...] = e * pl.reciprocal(denom, approx=True)


def _fused_pallas_forward(x_pad, wc, wl, bl, tile_n):
    n_pad = x_pad.shape[0]
    grid = (n_pad // tile_n,)
    return pl.pallas_call(
        _fused_kernel,
        out_shape=jax.ShapeDtypeStruct((n_pad, OUT_STORE), jnp.float32),
        grid=grid,
        in_specs=[
            pl.BlockSpec((tile_n, K_PAD), lambda i: (i, 0)),        # batch tile
            pl.BlockSpec((K_PAD, HIDDEN), lambda i: (0, 0)),        # resident
            pl.BlockSpec((HIDDEN, OUT_PAD_MM), lambda i: (0, 0)),   # resident
            pl.BlockSpec((1, OUT_PAD_MM), lambda i: (0, 0)),        # resident
        ],
        out_specs=pl.BlockSpec((tile_n, OUT_STORE), lambda i: (i, 0)),
        compiler_params=pltpu.CompilerParams(
            dimension_semantics=("parallel",),       # megacore-shard batch
            vmem_limit_bytes=32 * 1024 * 1024,       # safe on v5e/v6e/v7x
        ),
    )(x_pad, wc, wl, bl)


def _prepare_weights(params):
    """Fold conv-bias / BN-affine into matmul-form weights (done once per call)."""
    # Conv weight -> (K_PAD, HIDDEN) matmul form, bias in row BIAS_COL.
    wc = jnp.zeros((K_PAD, HIDDEN), jnp.float32)
    wc = wc.at[:SEQ_LEN, :].set(
        params["conv_w"].reshape(HIDDEN, SEQ_LEN).T.astype(jnp.float32))
    wc = wc.at[BIAS_COL, :].set(params["conv_b"].astype(jnp.float32))
    wc = wc.astype(jnp.bfloat16)

    # Eval-mode BN affine, folded into the FC layer:
    #   FC(BN(y)) = y @ (scale[:,None]*W^T) + (shift @ W^T + b)
    scale = params["bn_gamma"] / jnp.sqrt(params["bn_var"] + BN_EPS)
    shift = params["bn_beta"] - params["bn_mean"] * scale
    fc_wt = params["fc_w"].T.astype(jnp.float32)               # (HIDDEN, 10)
    wl_eff = scale[:, None].astype(jnp.float32) * fc_wt        # (HIDDEN, 10)
    bl_eff = shift.astype(jnp.float32) @ fc_wt + params["fc_b"].astype(jnp.float32)

    wl = (jnp.zeros((HIDDEN, OUT_PAD_MM), jnp.float32)
          .at[:, :NUM_CLASSES].set(wl_eff)).astype(jnp.bfloat16)
    bl = (jnp.full((1, OUT_PAD_MM), NEG_INF, jnp.float32)
          .at[0, :NUM_CLASSES].set(bl_eff))
    return wc, wl, bl


def model_forward(data, target, params, loss_fn=None):
    """Pallas implementation of Model.forward: returns (loss, h, target)."""
    n = data.shape[0]
    x = data.reshape(n, IN_CH * SEQ_LEN).astype(jnp.float32)    # (N, 5)

    wc, wl, bl = _prepare_weights(params)

    # --- batch tiling: >=2 parallel grid steps (v7x megacore), cap 2048 rows ---
    tile_n = max(8, min(2048, _round_up(-(-n // 2), 8)))
    n_pad = _round_up(n, tile_n)

    x_pad = jnp.zeros((n_pad, K_PAD), jnp.float32)
    x_pad = x_pad.at[:n, :SEQ_LEN].set(x)
    x_pad = x_pad.at[:, BIAS_COL].set(1.0)                      # ones col -> conv bias
    x_pad = x_pad.astype(jnp.bfloat16)

    h_pad = _fused_pallas_forward(x_pad, wc, wl, bl, tile_n)
    h = h_pad[:n, :NUM_CLASSES]

    # TODO(synk): the torch `loss` module is injected at construction; default
    # here to NLL over the softmax probabilities (== nn.NLLLoss on log(h)).
    if loss_fn is None:
        l = -jnp.mean(jnp.log(h[jnp.arange(n), target] + 1e-12))
    else:
        l = loss_fn(h, target)
    return l, h, target
    # TODO(synk): BatchNorm1d is implemented in eval mode (running stats);
    # training-mode batch statistics would need a cross-batch reduction pass.


def _reference_forward(data, target, params):
    """Pure-JAX reference mirroring the PyTorch forward (eval-mode BN), f32."""
    n = data.shape[0]
    x = data.reshape(n, SEQ_LEN).astype(jnp.float32)
    w = params["conv_w"].reshape(HIDDEN, SEQ_LEN)
    y = x @ w.T + params["conv_b"]
    y = jnp.where(y > 0, y, 0.1 * y)
    scale = params["bn_gamma"] / jnp.sqrt(params["bn_var"] + BN_EPS)
    y = (y - params["bn_mean"]) * scale + params["bn_beta"]
    z = y @ params["fc_w"].T + params["fc_b"]
    h = jax.nn.softmax(z, axis=1)
    l = -jnp.mean(jnp.log(h[jnp.arange(n), target] + 1e-12))
    return l, h, target


if __name__ == "__main__":
    key = jax.random.PRNGKey(0)
    ks = jax.random.split(key, 10)

    N = 16
    data = jax.random.normal(ks[0], (N, IN_CH, SEQ_LEN), jnp.float32)
    target = jax.random.randint(ks[1], (N,), 0, NUM_CLASSES)

    params = {
        "conv_w": 0.3 * jax.random.normal(ks[2], (HIDDEN, IN_CH, SEQ_LEN), jnp.float32),
        "conv_b": 0.1 * jax.random.normal(ks[3], (HIDDEN,), jnp.float32),
        "bn_gamma": 1.0 + 0.1 * jax.random.normal(ks[4], (HIDDEN,), jnp.float32),
        "bn_beta": 0.1 * jax.random.normal(ks[5], (HIDDEN,), jnp.float32),
        "bn_mean": 0.05 * jax.random.normal(ks[6], (HIDDEN,), jnp.float32),
        "bn_var": 0.5 + 0.1 * jnp.abs(jax.random.normal(ks[7], (HIDDEN,), jnp.float32)),
        "fc_w": 0.1 * jax.random.normal(ks[8], (NUM_CLASSES, HIDDEN), jnp.float32),
        "fc_b": 0.1 * jax.random.normal(ks[9], (NUM_CLASSES,), jnp.float32),
    }

    l, h, t = model_forward(data, target, params)
    jax.block_until_ready((l, h, t))

    # Sanity check against a pure-JAX f32 reference (bf16 MXU path tolerance).
    l_ref, h_ref, _ = _reference_forward(data, target, params)
    max_err = float(jnp.max(jnp.abs(h - h_ref)))
    if max_err > 2e-2:
        raise AssertionError(f"kernel output mismatch vs reference: max_err={max_err}")

    print("KERNEL_OK")
</pallas_src>

<mosaic_0001>
module attributes {stable_mosaic.version = 11 : i64} {
  func.func @_fused_kernel(%arg0: i32, %arg1: memref<8x8xbf16, #tpu.memory_space<vmem>>, %arg2: memref<8x256xbf16, #tpu.memory_space<vmem>>, %arg3: memref<256x128xbf16, #tpu.memory_space<vmem>>, %arg4: memref<1x128xf32, #tpu.memory_space<vmem>>, %arg5: memref<8x16xf32, #tpu.memory_space<vmem>>) attributes {dimension_semantics = [#tpu.dimension_semantics<parallel>], iteration_bounds = array<i64: 2>, scalar_prefetch = 0 : i64, scratch_operands = 0 : i64, tpu.core_type = #tpu.core_type<tc>, window_params = [{transform_indices = @transform_0, window_bounds = array<i64: 8, 8>}, {pipeline_mode = #tpu.pipeline_mode<synchronous>, transform_indices = @transform_1, window_bounds = array<i64: 8, 256>}, {pipeline_mode = #tpu.pipeline_mode<synchronous>, transform_indices = @transform_2, window_bounds = array<i64: 256, 128>}, {pipeline_mode = #tpu.pipeline_mode<synchronous>, transform_indices = @transform_3, window_bounds = array<i64: 1, 128>}, {transform_indices = @transform_4, window_bounds = array<i64: 8, 16>}]} {
    %c0 = arith.constant 0 : index
    %c0_0 = arith.constant 0 : index
    %0 = vector.load %arg1[%c0, %c0_0] : memref<8x8xbf16, #tpu.memory_space<vmem>>, vector<8x8xbf16>
    %c0_1 = arith.constant 0 : index
    %c0_2 = arith.constant 0 : index
    %1 = vector.load %arg2[%c0_1, %c0_2] : memref<8x256xbf16, #tpu.memory_space<vmem>>, vector<8x256xbf16>
    %cst = arith.constant dense<0.000000e+00> : vector<8x256xf32>
    %2 = tpu.matmul %0, %1, %cst {dimension_numbers = #tpu.dot_dimension_numbers<[1], [0], [0], [1], [0, 0, 1, 1], [], []>} : vector<8x8xbf16>, vector<8x256xbf16>, vector<8x256xf32> -> vector<8x256xf32>
    %cst_3 = arith.constant 1.000000e-01 : f32
    %3 = vector.broadcast %cst_3 : f32 to vector<8x256xf32>
    %4 = arith.mulf %3, %2 : vector<8x256xf32>
    %5 = arith.maximumf %2, %4 : vector<8x256xf32>
    %6 = arith.truncf %5 : vector<8x256xf32> to vector<8x256xbf16>
    %c0_4 = arith.constant 0 : index
    %c0_5 = arith.constant 0 : index
    %7 = vector.load %arg3[%c0_4, %c0_5] : memref<256x128xbf16, #tpu.memory_space<vmem>>, vector<256x128xbf16>
    %cst_6 = arith.constant dense<0.000000e+00> : vector<8x128xf32>
    %8 = tpu.matmul %6, %7, %cst_6 {dimension_numbers = #tpu.dot_dimension_numbers<[1], [0], [0], [1], [0, 0, 1, 1], [], []>} : vector<8x256xbf16>, vector<256x128xbf16>, vector<8x128xf32> -> vector<8x128xf32>
    %c0_7 = arith.constant 0 : index
    %c0_8 = arith.constant 0 : index
    %9 = vector.load %arg4[%c0_7, %c0_8] : memref<1x128xf32, #tpu.memory_space<vmem>>, vector<1x128xf32>
    %10 = vector.broadcast %9 : vector<1x128xf32> to vector<8x128xf32>
    %11 = arith.addf %8, %10 : vector<8x128xf32>
    %12 = vector.extract_strided_slice %11 {offsets = [0, 0], sizes = [8, 16], strides = [1, 1]} : vector<8x128xf32> to vector<8x16xf32>
    %cst_9 = arith.constant dense<0xFF800000> : vector<8xf32>
    %13 = vector.multi_reduction <maximumf>, %12, %cst_9 [1] : vector<8x16xf32> to vector<8xf32>
    %14 = vector.shape_cast %13 : vector<8xf32> to vector<8x1xf32>
    %15 = vector.broadcast %14 : vector<8x1xf32> to vector<8x16xf32>
    %16 = arith.subf %12, %15 : vector<8x16xf32>
    %17 = math.exp %16 : vector<8x16xf32>
    %cst_10 = arith.constant dense<0.000000e+00> : vector<8xf32>
    %18 = vector.multi_reduction <add>, %17, %cst_10 [1] : vector<8x16xf32> to vector<8xf32>
    %19 = vector.shape_cast %18 : vector<8xf32> to vector<8x1xf32>
    %20 = tpu.reciprocal %19 {approx = true} : vector<8x1xf32> -> vector<8x1xf32>
    %21 = vector.broadcast %20 : vector<8x1xf32> to vector<8x16xf32>
    %22 = arith.mulf %17, %21 : vector<8x16xf32>
    %c0_11 = arith.constant 0 : index
    %c0_12 = arith.constant 0 : index
    %23 = vector.load %arg5[%c0_11, %c0_12] : memref<8x16xf32, #tpu.memory_space<vmem>>, vector<8x16xf32>
    tpu.vector_store %arg5[%c0_11, %c0_12], %22 {strides = array<i32>} : memref<8x16xf32, #tpu.memory_space<vmem>>, vector<8x16xf32>,
    return
  }
  func.func @transform_0(%arg0: i32) -> (i32, i32) {
    %c0_i32 = arith.constant 0 : i32
    %c0_i32_0 = arith.constant 0 : i32
    return %arg0, %c0_i32 : i32, i32
  }
  func.func @transform_1(%arg0: i32) -> (i32, i32) {
    %c0_i32 = arith.constant 0 : i32
    %c0_i32_0 = arith.constant 0 : i32
    %c0_i32_1 = arith.constant 0 : i32
    return %c0_i32, %c0_i32_0 : i32, i32
  }
  func.func @transform_2(%arg0: i32) -> (i32, i32) {
    %c0_i32 = arith.constant 0 : i32
    %c0_i32_0 = arith.constant 0 : i32
    %c0_i32_1 = arith.constant 0 : i32
    return %c0_i32, %c0_i32_0 : i32, i32
  }
  func.func @transform_3(%arg0: i32) -> (i32, i32) {
    %c0_i32 = arith.constant 0 : i32
    %c0_i32_0 = arith.constant 0 : i32
    %c0_i32_1 = arith.constant 0 : i32
    return %c0_i32, %c0_i32_0 : i32, i32
  }
  func.func @transform_4(%arg0: i32) -> (i32, i32) {
    %c0_i32 = arith.constant 0 : i32
    %c0_i32_0 = arith.constant 0 : i32
    return %arg0, %c0_i32 : i32, i32
  }
}

</mosaic_0001>

<bundles_post_ra>
// kernel: tpu_custom_call.1
= control target key start
LH: loop header
LB: loop body
LE: loop exit
PB: predicated region body
PF: predicated region fallthrough
CT: control target
= control target key end

     0   :  { %9 = vsyncpa [#allocation3], 0  ;;  %s947_s0 = inlined_call_operand.vmem [shape: bf16[16,8], index: 0, kind: input, shape index: {}]   ;;  %s948_s1 = inlined_call_operand.vmem [shape: bf16[8,256], index: 1, kind: input, shape index: {}]   ;;  %s949_s2 = inlined_call_operand.hbm [shape: bf16[256,128], index: 2, kind: input, shape index: {}]   ;;  %s950_s3 = inlined_call_operand.vmem [shape: f32[1,128], index: 3, kind: input, shape index: {}]   ;;  %s951_s4 = inlined_call_operand.hbm [shape: f32[16,16], index: 4, kind: output, shape index: {}]  }
   0x1   :  { %10 = vsyncpa [#allocation4], 0 }
   0x2   :  { %12 = vsyncpa [#allocation4 + $0x1], 0  ;;  %s803_s15 = smov 0   ;;  %s805_s16 = smov 0  }
   0x3   :  { %s807_s17 = smov 0   ;;  %s809_s18 = smov 0  }
   0x4 LB: > { %s824_s19 = sadd.s32 4294967295, %s771_s18   ;;  %s547_s20 = sadd.s32 4294967294, %s771_s18   ;;  %s771_s18 = sphi %s809_s18, %s967_s18   ;;  %s767_s17 = sphi %s807_s17, %s966_s17   ;;  %s763_s16 = sphi %s805_s16, %s965_s16   ;;  %s759_s15 = sphi %s803_s15, %s964_s15  }
   0x5   : > { %s828_s21 = sadd.s32 1, %s771_s18   ;;  %s114_s22 = sadd.s32 1, %s767_s17 }
   0x6   : > { %s111_s23 = ssub.s32 %s771_s18, %s828_s21  ;;  %p124_p0 = scmp.ne.s32.totalorder %s767_s17, %s763_s16 }
   0x7   : > { %p112_p1 = scmp.eq.s32.totalorder %s111_s23, 0  ;;  %p125_p2 = scmp.eq.s32.totalorder %s824_s19, 1 }
   0x8   : > { %p130_p3 = scmp.ne.s32.totalorder %s763_s16, %s759_s15  ;;  %p131_p4 = scmp.eq.s32.totalorder %s547_s20, 1 }
   0x9   : > { %s839_s24 = scalar_select %p112_p1, %s767_s17, %s114_s22  }
   0xa   : > { %p841_p5 = por %p125_p2, %p124_p0  ;;  %p845_p6 = por %p131_p4, %p130_p3 }
   0xb   : > { %p548_p7 = scmp.ge.s32.totalorder %s771_s18, 1  ;;  %p138_p8 = scmp.lt.s32.totalorder %s771_s18, 3 }
   0xc   : > { %s955_s25 = scalar_select %p841_p5, 1, 0 }
   0xd   : > { %s956_s26 = scalar_select %p845_p6, 1, 0 }
   0xe   : > { %p952_p9 = scmp.eq.s32.totalorder %s824_s19, 0  ;;  %p852_p10 = pnand %p548_p7, %p138_p8 }
   0xf   : > { %s773_s28 = smov [#allocation2]   ;;  %s677_s7 = scalar_lea.hbm %s949_s2, 2048 }
  0x10   : > { %s957_s27 = scalar_select %p852_p10, 1, 0 }
  0x11   : > { %s153_s29 = sshll.u32 %s773_s28, 4  ;;  %p608_p11 = pneg %p852_p10  ;;  %s154_s29 = int_to_ptr.vmem [resolvable:$true] %s153_s29 }
  0x12   : > { %p678_p13 = scmp.ne.s32.totalorder %s949_s2, %s677_s7  ;;  %p684_p3 = scmp.lt.u32.totalorder %s677_s7, %s949_s2 }
  0x13   : > { %p860_p12 = pnand %p952_p9, %p608_p11 }
  0x15   : > { %p679_p0 = pneg %p860_p12 }
  0x17   : > { %p680_p1 = pnand %p679_p0, %p678_p13 }
  0x19   : > { %p681_p2 = pneg %p680_p1 }
  0x1b   : > { %p686_p4 = pnand %p684_p3, %p681_p2 }
  0x1d   : > { %689 = shalt.err (!%p686_p4)
}
  0x1e   : > { %s690_s12 = scalar_lea.vmem %s154_s29, 2048  ;;  %p698_p9 = scmp.lt.s32.totalorder %s154_s29, %s154_s29 }
  0x1f   : > { %p691_p7 = scmp.ne.s32.totalorder %s154_s29, %s690_s12  ;;  %p699_p6 = scmp.lt.s32.totalorder %s690_s12, %s690_s12 }
  0x21   : > { %p693_p8 = pnand %p691_p7, %p679_p0  ;;  %p700_p5 = por %p699_p6, %p698_p9 }
  0x23   : > { %p694_p11 = pneg %p693_p8 }
  0x25   : > { %p701_p10 = pnand %p700_p5, %p694_p11 }
  0x27   : > { %704 = shalt.err (!%p701_p10)
}
  0x28   : > { %s774_s13 = smov 64   ;;  %s775_s14 = smov 4  }
  0x29   : > { %611 = dma.hbm_to_vmem [thread:$0]  (!%p860_p12), %s949_s2, 2048, %s154_s29, [#allocation3], %s774_s13, %s774_s13, %s775_s14  }
  0x2a   : > { %p959_p13 = scmp.ne.s32.totalorder %s957_s27, 0 }
  0x2b   : > { %p960_p1 = scmp.eq.s32.totalorder (!%p959_p13), %s824_s19, 0 }
  0x2c   : > { %179 = sbr.rel (%p959_p13) target bundleno = 824 (0x338), region = 36 }
  0x33   : > { %750 = dma.done.wait (%p960_p1), [#allocation3], 2048   ;;  %p961_p0 = pmov %p960_p1 }
  0x34   : > { %p204_p5 = scmp.lt.s32.totalorder %s824_s19, 1  ;;  %v776_v0 = vmov 0   ;;  %v210_v1 = vld [vmem:[%s948_s1] sm:$0xff]  ;;  %vm220_vm0 = vcmask 1043456   ;;  %v657_v4 = vld [vmem:[#allocation2 + $0x40] sm:$0xff]   ;;  %v659_v8 = vld [vmem:[#allocation2 + $0x48] sm:$0xff]  }
  0x35   : > { %752 = vsyncadd (%p961_p0), [#allocation3], 4294965248  ;;  %259 = vmatprep.mubr.bf16.mxu0 %v776_v0  ;;  %v556_v2 = vcombine.high %v210_v1, %v210_v1  ;;  %v555_v3 = vcombine.low %v210_v1, %v210_v1  ;;  %v658_v6 = vld [vmem:[#allocation2] sm:$0xff]   ;;  %580 = vmatprep.subr.bf16.mxu1 %v657_v4  ;;  %vm216_vm1 = vcmask 64512   ;;  %v660_v9 = vld [vmem:[#allocation2 + $0x8] sm:$0xff]   ;;  %vm449_vm2 = vcmask 130048  }
  0x36   : > { %s205_s23 = scalar_select %p204_p5, %s824_s19, 1  ;;  %581 = vmatpush3.bf16.msra.mxu1 %v658_v6  ;;  %v661_v10 = vld [vmem:[#allocation2 + $0x50] sm:$0xff]   ;;  %v663_v12 = vld [vmem:[#allocation2 + $0x58] sm:$0xff]   ;;  %v665_v14 = vld [vmem:[#allocation2 + $0x60] sm:$0xff]  }
  0x37   : > { %557 = vmatprep.subr.msk.bf16.mxu0 %vm220_vm0, %v556_v2  ;;  %v222_v7 = vsel %vm220_vm0, %v555_v3, 0  ;;  %582 = vmatprep.subr.bf16.mxu1 %v659_v8  ;;  %v662_v11 = vld [vmem:[#allocation2 + $0x10] sm:$0xff]   ;;  %v664_v13 = vld [vmem:[#allocation2 + $0x18] sm:$0xff]   ;;  %v666_v15 = vld [vmem:[#allocation2 + $0x20] sm:$0xff]   ;;  %s201_s9 = sand.u32 1, %s763_s16   ;;  %s577_s11 = sshll.u32 %s824_s19, 7 }
  0x38   : > { %s554_s28 = sshll.u32 %s205_s23, 2  ;;  %228 = vmatpush1.bf16.msra.mxu0 %v222_v7  ;;  %v667_v16 = vld [vmem:[#allocation2 + $0x68] sm:$0xff]   ;;  %v669_v18 = vld [vmem:[#allocation2 + $0x70] sm:$0xff]   ;;  %v671_v20 = vld [vmem:[#allocation2 + $0x78] sm:$0xff]   ;;  %s553_s10 = sshll.u32 %s201_s9, 3 }
  0x39   : > { %s207_s29 = scalar_lea.vmem %s947_s0, %s554_s28  ;;  %v668_v17 = vld [vmem:[#allocation2 + $0x28] sm:$0xff]   ;;  %v670_v19 = vld [vmem:[#allocation2 + $0x30] sm:$0xff]   ;;  %v672_v21 = vld [vmem:[#allocation2 + $0x38] sm:$0xff]   ;;  %s203_s12 = scalar_lea.vmem [#allocation5], %s553_s10 }
  0x3a   : > { %v209_v5 = vld [vmem:[%s207_s29] sm:$0xf]  ;;  %583 = vmatpush3.bf16.msra.mxu1 %v660_v9  ;;  %s476_s13 = sshll.u32 %s203_s12, 4  ;;  %s904_s22 = scalar_lea.hbm %s951_s4, %s577_s11  ;;  %s906_s13 = int_to_ptr.vmem [resolvable:$true] %s476_s13 }
  0x3b   : > { %558 = vmatmul.mubr.msk.bf16.vlgmr.msra.gmra.mrb[0].mxu0 %vm216_vm1, %v209_v5  ;;  %584 = vmatprep.subr.bf16.mxu1 %v661_v10  ;;  %v559_v34 = vld [vmem:[%s950_s3] ss:$0 sm:$0xff]  ;;  %s463_s23 = scalar_lea.sflag [#allocation4], %s201_s9  ;;  %s705_s28 = scalar_lea.vmem %s906_s13, 128 }
  0x3c   : > { %p706_p6 = scmp.ne.s32.totalorder %s906_s13, %s705_s28  ;;  %p962_p9 = scmp.ne.s32.totalorder %s955_s25, 0 }
  0x3d   : > { %s777_s19 = smov [#allocation5]  }
  0x3e   : > { %585 = vmatpush3.bf16.msra.mxu1 %v662_v11  ;;  %p707_p10 = pnand %p706_p6, %p962_p9  ;;  %s709_s30 = sshll.u32 %s777_s19, 4  ;;  %s710_s30 = int_to_ptr.vmem [resolvable:$false] %s709_s30 }
  0x3f   : > { %586 = vmatprep.subr.bf16.mxu1 %v663_v12  ;;  %s711_s5 = scalar_lea.vmem %s710_s30, 256  ;;  %p712_p2 = scmp.lt.s32.totalorder %s906_s13, %s710_s30 }
  0x40   : > { %p708_p12 = pneg %p707_p10  ;;  %p713_p3 = scmp.lt.s32.totalorder %s711_s5, %s705_s28 }
  0x42   : > { %587 = vmatpush3.bf16.msra.mxu1 %v664_v13  ;;  %p714_p4 = por %p713_p3, %p712_p2 }
  0x43   : > { %588 = vmatprep.subr.bf16.mxu1 %v665_v14 }
  0x44   : > { %p715_p7 = pnand %p714_p4, %p708_p12 }
  0x46   : > { %589 = vmatpush3.bf16.msra.mxu1 %v666_v15 }
  0x47   : > { %590 = vmatprep.subr.bf16.mxu1 %v667_v16 }
  0x4a   : > { %591 = vmatpush3.bf16.msra.mxu1 %v668_v17 }
  0x4b   : > { %592 = vmatprep.subr.bf16.mxu1 %v669_v18 }
  0x4e   : > { %593 = vmatpush3.bf16.msra.mxu1 %v670_v19 }
  0x4f   : > { %594 = vmatprep.subr.bf16.mxu1 %v671_v20 }
  0x52   : > { %595 = vmatpush3.bf16.msra.mxu1 %v672_v21 }
 0x10e   : > { %v261_v22 = vpop.f32.mrb[0].mxu0 }
 0x10f   : > { %v268_v23 = vmul.f32 0.1, %v261_v22  ;;  %v263_v24 = vpop.f32.mrb[1].mxu0 }
 0x110   : > { %v269_v25 = vmul.f32 0.1, %v263_v24  ;;  %v265_v26 = vpop.f32.mrb[2].mxu0 }
 0x111   : > { %v270_v27 = vmax.f32 %v261_v22, %v268_v23  ;;  %v266_v28 = vpop.f32.mrb[3].mxu0 }
 0x112   : > { %v271_v29 = vmax.f32 %v263_v24, %v269_v25 }
 0x113   : > { %v272_v31 = vpack.c.bf16 %v270_v27, %v270_v27 }
 0x114   : > { %v273_v30 = vpack.c.bf16 %v271_v29, %v271_v29 }
 0x116   : > { %441 = vmatprep.mubr.bf16.mxu1 %v273_v30 }
 0x117   : > { %442 = vmatmul.mubr.bf16.vlgmr.msra.gmra.mrb[0].mxu1 %v272_v31 }
 0x1ea   : > { %v596_v32 = vpop.f32.mrb[0].mxu1 }
 0x1eb   : > { %v597_v33 = vpop.f32.mrb[1].mxu1 }
 0x1ec   : > { %v598_v35 = vadd.f32 %v597_v33, %v596_v32  ;;  %v599_v36 = vpop.f32.mrb[2].mxu1 }
 0x1ed   : > { %v600_v37 = vpop.f32.mrb[3].mxu1 }
 0x1ee   : > { %v444_v38 = vadd.f32 %v598_v35, %v559_v34 }
 0x1f0   : > { %v450_v39 = vsel %vm449_vm2, %v444_v38, -inf }
 0x1f1   : > { %451 = vmax.xlane.f32.xlu0 %v450_v39 }
 0x27e   : > { %v452_v40 = vpop.xlane.xlu0 %451 }
 0x27f   : > { %v453_v41 = vsub.f32 %v444_v38, %v452_v40 }
 0x281   : > { %v454_v42 = vmul.f32 1.442695, %v453_v41 }
 0x283   : > { %673 = vpow2.f32 %v454_v42 }
 0x28d   : > { %v674_v43 = vpop.eup %673 }
 0x28e   : > { %v456_v44 = vsel %vm449_vm2, %v674_v43, 0.0 }
 0x28f   : > { %457 = vadd.xlane.f32.xlu0 %v456_v44 }
 0x31c   : > { %v458_v45 = vpop.xlane.xlu0 %457 }
 0x31d   : > { %675 = vrcp.f32 %v458_v45 }
 0x327   : > { %v676_v46 = vpop.eup %675 }
 0x328   : > { %v460_v47 = vmul.f32 %v676_v46, %v674_v43 }
 0x32a   : > { %461 = vst.msk [vmem:[%s203_s12] sm:$0xff] %vm449_vm2, %v460_v47 }
 0x32b   : > { %718 = shalt.err (!%p715_p7)
}
 0x32c   : > { %s719_s29 = scalar_lea.hbm %s904_s22, 128  ;;  %s723_s7 = scalar_lea.hbm %s951_s4, 256 }
 0x32d   : > { %p720_p8 = scmp.ne.s32.totalorder %s904_s22, %s719_s29  ;;  %p724_p1 = scmp.lt.u32.totalorder %s904_s22, %s951_s4 }
 0x32e   : > { %p725_p0 = scmp.lt.u32.totalorder %s723_s7, %s719_s29  ;;  %p727_p6 = scmp.lt.u32.totalorder %s719_s29, %s904_s22 }
 0x32f   : > { %p721_p11 = pnand %p720_p8, %p962_p9 }
 0x330   : > { %p726_p5 = por %p725_p0, %p724_p1 }
 0x331   : > { %p722_p13 = pneg %p721_p11 }
 0x332   : > { %p728_p10 = por %p727_p6, %p726_p5 }
 0x334   : > { %p729_p12 = pnand %p728_p10, %p722_p13 }
 0x336   : > { %732 = shalt.err (!%p729_p12)
}
 0x337   : > { %606 = dma.vmem_to_hbm [thread:$0]  (%p962_p9), %s906_s13, 128, %s904_s22, %s463_s23  }
 0x338 PF: > { %p618_p2 = scmp.ge.s32.totalorder %s771_s18, 2  ;;  %s488_s10 = sand.u32 1, %s759_s15  }
 0x339   : > { %p963_p3 = scmp.ne.s32.totalorder %s956_s26, 0  ;;  %s489_s11 = scalar_lea.sflag [#allocation4], %s488_s10 }
 0x33b   : > { %p613_p4 = pnand %p618_p2, %p963_p3 }
 0x33d   : > { %754 = dma.done.wait (!%p613_p4), %s489_s11, 128  }
 0x33e   : > { %756 = vsyncadd (!%p613_p4), %s489_s11, 4294967168  ;;  %p15_p7 = scmp.ge.s32.totalorder %s828_s21, 4   ;;  %s964_s15 = smov %s763_s16 }
 0x33f   : > { %s965_s16 = smov %s767_s17  ;;  %s966_s17 = smov %s839_s24 }
 0x340   : > { %s967_s18 = smov %s828_s21  ;;  %17 = sbr.rel (!%p15_p7) target bundleno = 4 (0x4), region = 76 }
 0x347   :  { %494 = vsyncpa [#allocation3], 1 }
 0x348   :  { %496 = vsyncpa [#allocation3 + $0x1], 1 }
 0x349   :  { %497 = vsyncpa [#allocation4], 1 }
 0x34a   :  { %499 = vsyncpa [#allocation4 + $0x1], 1 }

</bundles_post_ra>
